<compile_context>
chip_gen: v7x
topology: tpu7x:2x2x1
jax: 0.10.0
libtpu: 0.0.40
codegen_flags: <defaults>
</compile_context>

<pallas_src>
import jax
import jax.numpy as jnp
from jax.experimental import pallas as pl
from jax.experimental.pallas import tpu as pltpu


def _to_weights_dtype_kernel(x_ref, w1_ref, b1_ref, w2_ref, b2_ref, o_ref):
    # Linear1: bf16 operands straight to the MXU, f32 accumulation.
    x = x_ref[...].astype(w1_ref.dtype)
    h = jnp.dot(x, w1_ref[...], preferred_element_type=jnp.float32)
    h = h + b1_ref[...]                      # f32 bias add (VPU)
    # SiLU in f32 (sigmoid on the EUP, multiply on the VPU).
    h = h * jax.nn.sigmoid(h)
    # Linear2: cast activations to the weight dtype for the MXU, accumulate f32.
    y = jnp.dot(h.astype(w2_ref.dtype), w2_ref[...],
                preferred_element_type=jnp.float32)
    y = y + b2_ref[...]
    # ToWeightsDType: cast to the weights dtype only at the final store.
    o_ref[...] = y.astype(o_ref.dtype)


def prepare_params(w1, b1, w2, b2, *, weights_dtype=jnp.bfloat16):
    """One-time parameter prep (hoisted out of the per-step call path)."""
    H = w1.shape[1]
    return (
        w1.astype(weights_dtype),
        b1.reshape(1, H).astype(jnp.float32),
        w2.astype(weights_dtype),
        b2.reshape(1, H).astype(jnp.float32),
    )


def to_weights_dtype_forward(x, w1, b1, w2, b2, *, out_dtype=jnp.bfloat16):
    """Fused TimestepEmbedding forward + dtype cast (ToWeightsDType.forward).

    Expects parameters already prepared by `prepare_params` (bf16 weights,
    (1, H) f32 biases). x is (B, D_in); output is (B, H) in `out_dtype`.
    """
    B, D_in = x.shape
    H = w1.shape[1]
    assert w1.shape == (D_in, H)
    assert w2.shape == (H, H)
    assert b1.shape == (1, H) and b2.shape == (1, H)

    # Whole-array blocks resident in VMEM; grid-less single invocation.
    vmem_spec = pl.BlockSpec(memory_space=pltpu.MemorySpace.VMEM)

    def _nbytes(a):
        return a.size * jnp.dtype(a.dtype).itemsize

    out_nbytes = B * H * jnp.dtype(out_dtype).itemsize
    cost = pl.CostEstimate(
        flops=2 * B * D_in * H + 2 * B * H * H,
        transcendentals=B * H,  # sigmoid
        bytes_accessed=(_nbytes(x) + _nbytes(w1) + _nbytes(b1)
                        + _nbytes(w2) + _nbytes(b2) + out_nbytes),
    )

    return pl.pallas_call(
        _to_weights_dtype_kernel,
        out_shape=jax.ShapeDtypeStruct((B, H), out_dtype),
        in_specs=[vmem_spec] * 5,
        out_specs=vmem_spec,
        cost_estimate=cost,
        compiler_params=pltpu.CompilerParams(vmem_limit_bytes=64 * 1024 * 1024),
    )(x, w1, b1, w2, b2)


def reference_forward(x, w1_bf16, b1, w2_bf16, b2, out_dtype=jnp.bfloat16):
    """Pure-JAX reference performing the same bf16-weight computation."""
    h = jnp.dot(x.astype(w1_bf16.dtype), w1_bf16,
                preferred_element_type=jnp.float32) + b1
    h = h * jax.nn.sigmoid(h)
    y = jnp.dot(h.astype(w2_bf16.dtype), w2_bf16,
                preferred_element_type=jnp.float32) + b2
    return y.astype(out_dtype)


if __name__ == "__main__":
    # Small shapes consistent with the module's canonical use
    # (TimestepEmbedding(16, 1280) scaled down): batch=8, in_dim=16, hidden=128.
    B, D_in, H = 8, 16, 128

    key = jax.random.PRNGKey(0)
    kx, kw1, kb1, kw2, kb2 = jax.random.split(key, 5)

    x = jax.random.normal(kx, (B, D_in), dtype=jnp.float32)
    # Deterministic synthetic parameters (no checkpoint load).
    w1 = jax.random.normal(kw1, (D_in, H), dtype=jnp.float32) * 0.05
    b1 = jax.random.normal(kb1, (H,), dtype=jnp.float32) * 0.01
    w2 = jax.random.normal(kw2, (H, H), dtype=jnp.float32) * 0.05
    b2 = jax.random.normal(kb2, (H,), dtype=jnp.float32) * 0.01

    # One-time prep (bf16 weights, (1, H) biases) — outside the per-step path.
    w1_p, b1_p, w2_p, b2_p = prepare_params(w1, b1, w2, b2,
                                            weights_dtype=jnp.bfloat16)

    out = to_weights_dtype_forward(x, w1_p, b1_p, w2_p, b2_p,
                                   out_dtype=jnp.bfloat16)
    out = jax.block_until_ready(out)

    ref = reference_forward(x, w1_p, b1_p, w2_p, b2_p, out_dtype=jnp.bfloat16)
    assert out.shape == (B, H)
    assert out.dtype == jnp.bfloat16
    assert jnp.allclose(out.astype(jnp.float32), ref.astype(jnp.float32),
                        atol=2e-2, rtol=2e-2)

    print("KERNEL_OK")
</pallas_src>

<mosaic_0001>
module attributes {stable_mosaic.version = 11 : i64} {
  func.func @_to_weights_dtype_kernel(%arg0: memref<8x16xf32, #tpu.memory_space<vmem>>, %arg1: memref<16x128xbf16, #tpu.memory_space<vmem>>, %arg2: memref<1x128xf32, #tpu.memory_space<vmem>>, %arg3: memref<128x128xbf16, #tpu.memory_space<vmem>>, %arg4: memref<1x128xf32, #tpu.memory_space<vmem>>, %arg5: memref<8x128xbf16, #tpu.memory_space<vmem>>) attributes {dimension_semantics = [], scalar_prefetch = 0 : i64, scratch_operands = 0 : i64, tpu.core_type = #tpu.core_type<tc>} {
    %c0 = arith.constant 0 : index
    %c0_0 = arith.constant 0 : index
    %0 = vector.load %arg0[%c0, %c0_0] : memref<8x16xf32, #tpu.memory_space<vmem>>, vector<8x16xf32>
    %1 = arith.truncf %0 : vector<8x16xf32> to vector<8x16xbf16>
    %c0_1 = arith.constant 0 : index
    %c0_2 = arith.constant 0 : index
    %2 = vector.load %arg1[%c0_1, %c0_2] : memref<16x128xbf16, #tpu.memory_space<vmem>>, vector<16x128xbf16>
    %cst = arith.constant dense<0.000000e+00> : vector<8x128xf32>
    %3 = tpu.matmul %1, %2, %cst {dimension_numbers = #tpu.dot_dimension_numbers<[1], [0], [0], [1], [0, 0, 1, 1], [], []>} : vector<8x16xbf16>, vector<16x128xbf16>, vector<8x128xf32> -> vector<8x128xf32>
    %c0_3 = arith.constant 0 : index
    %c0_4 = arith.constant 0 : index
    %4 = vector.load %arg2[%c0_3, %c0_4] : memref<1x128xf32, #tpu.memory_space<vmem>>, vector<1x128xf32>
    %5 = vector.broadcast %4 : vector<1x128xf32> to vector<8x128xf32>
    %6 = arith.addf %3, %5 : vector<8x128xf32>
    %7 = arith.negf %6 : vector<8x128xf32>
    %8 = math.exp %7 : vector<8x128xf32>
    %cst_5 = arith.constant 1.000000e+00 : f32
    %9 = vector.broadcast %cst_5 : f32 to vector<8x128xf32>
    %10 = arith.addf %9, %8 : vector<8x128xf32>
    %11 = arith.divf %9, %10 : vector<8x128xf32>
    %12 = arith.mulf %6, %11 : vector<8x128xf32>
    %13 = arith.truncf %12 : vector<8x128xf32> to vector<8x128xbf16>
    %c0_6 = arith.constant 0 : index
    %c0_7 = arith.constant 0 : index
    %14 = vector.load %arg3[%c0_6, %c0_7] : memref<128x128xbf16, #tpu.memory_space<vmem>>, vector<128x128xbf16>
    %cst_8 = arith.constant dense<0.000000e+00> : vector<8x128xf32>
    %15 = tpu.matmul %13, %14, %cst_8 {dimension_numbers = #tpu.dot_dimension_numbers<[1], [0], [0], [1], [0, 0, 1, 1], [], []>} : vector<8x128xbf16>, vector<128x128xbf16>, vector<8x128xf32> -> vector<8x128xf32>
    %c0_9 = arith.constant 0 : index
    %c0_10 = arith.constant 0 : index
    %16 = vector.load %arg4[%c0_9, %c0_10] : memref<1x128xf32, #tpu.memory_space<vmem>>, vector<1x128xf32>
    %17 = vector.broadcast %16 : vector<1x128xf32> to vector<8x128xf32>
    %18 = arith.addf %15, %17 : vector<8x128xf32>
    %19 = arith.truncf %18 : vector<8x128xf32> to vector<8x128xbf16>
    %c0_11 = arith.constant 0 : index
    %c0_12 = arith.constant 0 : index
    %20 = vector.load %arg5[%c0_11, %c0_12] : memref<8x128xbf16, #tpu.memory_space<vmem>>, vector<8x128xbf16>
    tpu.vector_store %arg5[%c0_11, %c0_12], %19 {strides = array<i32>} : memref<8x128xbf16, #tpu.memory_space<vmem>>, vector<8x128xbf16>,
    return
  }
}

</mosaic_0001>

<bundles_post_ra>
// kernel: tpu_custom_call.1
= control target key start
LH: loop header
LB: loop body
LE: loop exit
PB: predicated region body
PF: predicated region fallthrough
CT: control target
= control target key end

     0   :  { %10 = vsyncpa [#allocation3], 0  ;;  %s608_s0 = inlined_call_operand.hbm [shape: f32[8,16], index: 0, kind: input, shape index: {}]   ;;  %s609_s1 = inlined_call_operand.hbm [shape: bf16[16,128], index: 1, kind: input, shape index: {}]   ;;  %s610_s2 = inlined_call_operand.hbm [shape: f32[1,128], index: 2, kind: input, shape index: {}]   ;;  %s611_s3 = inlined_call_operand.hbm [shape: bf16[128,128], index: 3, kind: input, shape index: {}]   ;;  %s612_s4 = inlined_call_operand.hbm [shape: f32[1,128], index: 4, kind: input, shape index: {}]   ;;  %s613_s5 = inlined_call_operand.hbm [shape: bf16[8,128], index: 5, kind: output, shape index: {}]  }
   0x1   :  { %11 = vsyncpa [#allocation6], 0 }
   0x2   :  { %12 = vsyncpa [#allocation9], 0 }
   0x3   :  { %13 = vsyncpa [#allocation4], 0  ;;  %s496_s18 = smov [#allocation5]   ;;  %s356_s22 = scalar_lea.hbm %s609_s1, 128 }
   0x4   :  { %s29_s19 = sshll.u32 %s496_s18, 4  ;;  %p357_p0 = scmp.ne.s32.totalorder %s609_s1, %s356_s22  ;;  %s30_s19 = int_to_ptr.vmem [resolvable:$true] %s29_s19 }
   0x5   :  { %p360_p1 = scmp.lt.u32.totalorder %s356_s22, %s609_s1 }
   0x7   :  { %p362_p2 = pnand %p360_p1, %p357_p0 }
   0x9   :  { %365 = shalt.err (!%p362_p2)
}
   0xa   :  { %s366_s27 = scalar_lea.vmem %s30_s19, 128  ;;  %p371_p4 = scmp.lt.s32.totalorder %s30_s19, %s30_s19 }
   0xb   :  { %p367_p3 = scmp.ne.s32.totalorder %s30_s19, %s366_s27  ;;  %p372_p5 = scmp.lt.s32.totalorder %s366_s27, %s366_s27 }
   0xd   :  { %p373_p6 = por %p372_p5, %p371_p4 }
   0xf   :  { %p374_p7 = pnand %p373_p6, %p367_p3 }
  0x11   :  { %377 = shalt.err (!%p374_p7)
}
  0x12   :  { %s497_s28 = smov 64   ;;  %s498_s29 = smov 4  }
  0x13   :  { %35 = dma.hbm_to_vmem [thread:$0]  %s609_s1, 128, %s30_s19, [#allocation6], %s497_s28, %s497_s28, %s498_s29  }
  0x14   :  { %s499_s7 = smov [#allocation8]   ;;  %s500_s9 = smov [#allocation2]  }
  0x15   :  { %s51_s8 = sshll.u32 %s499_s7, 4  ;;  %s20_s10 = sshll.u32 %s500_s9, 4  ;;  %s52_s8 = int_to_ptr.vmem [resolvable:$true] %s51_s8  ;;  %s21_s10 = int_to_ptr.vmem [resolvable:$true] %s20_s10 }
  0x16   :  { %s378_s13 = scalar_lea.hbm %s611_s3, 1024 }
  0x17   :  { %p379_p8 = scmp.ne.s32.totalorder %s611_s3, %s378_s13  ;;  %p382_p9 = scmp.lt.u32.totalorder %s378_s13, %s611_s3 }
  0x19   :  { %p384_p10 = pnand %p382_p9, %p379_p8 }
  0x1b   :  { %387 = shalt.err (!%p384_p10)
}
  0x1c   :  { %s388_s1 = scalar_lea.vmem %s52_s8, 1024  ;;  %p393_p12 = scmp.lt.s32.totalorder %s52_s8, %s52_s8 }
  0x1d   :  { %p389_p11 = scmp.ne.s32.totalorder %s52_s8, %s388_s1  ;;  %p394_p13 = scmp.lt.s32.totalorder %s388_s1, %s388_s1 }
  0x1f   :  { %p395_p0 = por %p394_p13, %p393_p12 }
  0x21   :  { %p396_p1 = pnand %p395_p0, %p389_p11 }
  0x23   :  { %399 = shalt.err (!%p396_p1)
}
  0x24   :  { %57 = dma.hbm_to_vmem [thread:$0]  %s611_s3, 1024, %s52_s8, [#allocation9], %s497_s28, %s497_s28, %s498_s29  }
  0x25   :  { %s400_s22 = scalar_lea.hbm %s608_s0, 128 }
  0x26   :  { %p401_p2 = scmp.ne.s32.totalorder %s608_s0, %s400_s22  ;;  %p404_p3 = scmp.lt.u32.totalorder %s400_s22, %s608_s0 }
  0x28   :  { %p406_p4 = pnand %p404_p3, %p401_p2 }
  0x2a   :  { %409 = shalt.err (!%p406_p4)
}
  0x2b   :  { %s410_s27 = scalar_lea.vmem %s21_s10, 128  ;;  %p415_p6 = scmp.lt.s32.totalorder %s21_s10, %s21_s10 }
  0x2c   :  { %p411_p5 = scmp.ne.s32.totalorder %s21_s10, %s410_s27  ;;  %p416_p7 = scmp.lt.s32.totalorder %s410_s27, %s410_s27 }
  0x2e   :  { %p417_p8 = por %p416_p7, %p415_p6 }
  0x30   :  { %p418_p9 = pnand %p417_p8, %p411_p5 }
  0x32   :  { %421 = shalt.err (!%p418_p9)
}
  0x33   :  { %23 = dma.hbm_to_vmem [thread:$0]  %s608_s0, 128, %s21_s10, [#allocation3]  }
  0x34   :  { %s501_s29 = smov [#allocation7]   ;;  %s502_s6 = smov [#allocation10]  }
  0x35   :  { %s42_s30 = sshll.u32 %s501_s29, 4  ;;  %s64_s7 = sshll.u32 %s502_s6, 4  ;;  %s43_s30 = int_to_ptr.vmem [resolvable:$true] %s42_s30  ;;  %s65_s7 = int_to_ptr.vmem [resolvable:$true] %s64_s7 }
  0x36   :  { %s422_s11 = scalar_lea.hbm %s610_s2, 16 }
  0x37   :  { %p423_p10 = scmp.ne.s32.totalorder %s610_s2, %s422_s11  ;;  %p426_p11 = scmp.lt.u32.totalorder %s422_s11, %s610_s2 }
  0x39   :  { %p428_p12 = pnand %p426_p11, %p423_p10 }
  0x3b   :  { %431 = shalt.err (!%p428_p12)
}
  0x3c   :  { %s432_s0 = scalar_lea.vmem %s43_s30, 16  ;;  %s436_s10 = scalar_lea.vmem %s43_s30, 32 }
  0x3d   :  { %p433_p13 = scmp.ne.s32.totalorder %s43_s30, %s432_s0  ;;  %p437_p0 = scmp.lt.s32.totalorder %s43_s30, %s43_s30 }
  0x3e   :  { %p438_p1 = scmp.lt.s32.totalorder %s436_s10, %s432_s0 }
  0x40   :  { %p439_p2 = por %p438_p1, %p437_p0 }
  0x42   :  { %p440_p3 = pnand %p439_p2, %p433_p13 }
  0x44   :  { %443 = shalt.err (!%p440_p3)
}
  0x45   :  { %45 = dma.hbm_to_vmem [thread:$0]  %s610_s2, 16, %s43_s30, [#allocation6]  }
  0x46   :  { %s444_s19 = scalar_lea.hbm %s612_s4, 16 }
  0x47   :  { %p445_p4 = scmp.ne.s32.totalorder %s612_s4, %s444_s19  ;;  %p448_p5 = scmp.lt.u32.totalorder %s444_s19, %s612_s4 }
  0x49   :  { %p450_p6 = pnand %p448_p5, %p445_p4 }
  0x4b   :  { %453 = shalt.err (!%p450_p6)
}
  0x4c   :  { %s454_s24 = scalar_lea.vmem %s65_s7, 16  ;;  %s458_s25 = scalar_lea.vmem %s65_s7, 32 }
  0x4d   :  { %p455_p7 = scmp.ne.s32.totalorder %s65_s7, %s454_s24  ;;  %p459_p8 = scmp.lt.s32.totalorder %s65_s7, %s65_s7 }
  0x4e   :  { %p460_p9 = scmp.lt.s32.totalorder %s458_s25, %s454_s24 }
  0x50   :  { %p461_p10 = por %p460_p9, %p459_p8 }
  0x52   :  { %p462_p11 = pnand %p461_p10, %p455_p7 }
  0x54   :  { %465 = shalt.err (!%p462_p11)
}
  0x55   :  { %67 = dma.hbm_to_vmem [thread:$0]  %s612_s4, 16, %s65_s7, [#allocation9]  }
  0x56   :  { %488 = dma.done.wait [#allocation3], 128  }
  0x57   :  { %489 = vsyncadd [#allocation3], 4294967168 }
  0x58   :  { %490 = dma.done.wait [#allocation6], 144  }
  0x59   :  { %491 = vsyncadd [#allocation6], 4294967152 }
  0x5a   :  { %492 = dma.done.wait [#allocation9], 1040  }
  0x5b   :  { %493 = vsyncadd [#allocation9], 4294966256  ;;  %v503_v0 = vmov 0.0   ;;  %vm504_vm0 = vmmov 0   ;;  %v343_v1 = vld [vmem:[#allocation5] sm:$0xff]   ;;  %v84_v2 = vld [vmem:[#allocation2] sm:$0xff] }
  0x5c   :  { %307 = vmatprep.subr.bf16.mxu0 %v503_v0  ;;  %309 = vmatprep.mubr.msk.bf16.mxu0 %vm504_vm0, %v503_v0  ;;  %vm101_vm1 = vcmask 130048   ;;  %v85_v3 = vpack.c.bf16 %v84_v2, %v84_v2  ;;  %v344_v4 = vld [vmem:[#allocation8] sm:$0xff]   ;;  %v345_v5 = vld [vmem:[#allocation8 + $0x8] sm:$0xff]   ;;  %v346_v6 = vld [vmem:[#allocation8 + $0x10] sm:$0xff]   ;;  %s505_s4 = smov [#allocation11]  }
  0x5d   :  { %313 = vmatprep.subr.bf16.mxu1 %v503_v0  ;;  %329 = vmatprep.mubr.msk.bf16.mxu1 %vm504_vm0, %v503_v0  ;;  %v347_v7 = vld [vmem:[#allocation8 + $0x18] sm:$0xff]   ;;  %v348_v8 = vld [vmem:[#allocation8 + $0x20] sm:$0xff]   ;;  %v349_v9 = vld [vmem:[#allocation8 + $0x28] sm:$0xff]   ;;  %s272_s27 = sshll.u32 %s505_s4, 4  ;;  %s273_s27 = int_to_ptr.vmem [resolvable:$true] %s272_s27 }
  0x5e   :  { %308 = vmatpush3.bf16.msra.mxu0 %v343_v1  ;;  %314 = vmatpush3.bf16.msra.mxu1 %v344_v4  ;;  %v350_v10 = vld [vmem:[#allocation8 + $0x30] sm:$0xff]   ;;  %v351_v11 = vld [vmem:[#allocation8 + $0x38] sm:$0xff]   ;;  %v287_v24 = vld [vmem:[#allocation10] ss:$0 sm:$0xff]  ;;  %s466_s3 = scalar_lea.vmem %s273_s27, 64  ;;  %p471_p13 = scmp.lt.s32.totalorder %s273_s27, %s273_s27 }
  0x5f   :  { %315 = vmatprep.subr.bf16.mxu1 %v503_v0  ;;  %v283_v12 = vld [vmem:[#allocation7] ss:$0 sm:$0xff]  ;;  %p467_p12 = scmp.ne.s32.totalorder %s273_s27, %s466_s3  ;;  %p472_p0 = scmp.lt.s32.totalorder %s466_s3, %s466_s3 }
  0x61   :  { %310 = vmatmul.mubr.msk.bf16.vlgmr.msra.gmra.mrb[0].mxu0 %vm101_vm1, %v85_v3  ;;  %p473_p1 = por %p472_p0, %p471_p13 }
  0x62   :  { %316 = vmatpush3.bf16.msra.mxu1 %v345_v5 }
  0x63   :  { %317 = vmatprep.subr.bf16.mxu1 %v503_v0  ;;  %p474_p2 = pnand %p473_p1, %p467_p12 }
  0x66   :  { %318 = vmatpush3.bf16.msra.mxu1 %v346_v6 }
  0x67   :  { %319 = vmatprep.subr.bf16.mxu1 %v503_v0 }
  0x6a   :  { %320 = vmatpush3.bf16.msra.mxu1 %v347_v7 }
  0x6b   :  { %321 = vmatprep.subr.bf16.mxu1 %v503_v0 }
  0x6e   :  { %322 = vmatpush3.bf16.msra.mxu1 %v348_v8 }
  0x6f   :  { %323 = vmatprep.subr.bf16.mxu1 %v503_v0 }
  0x72   :  { %324 = vmatpush3.bf16.msra.mxu1 %v349_v9 }
  0x73   :  { %325 = vmatprep.subr.bf16.mxu1 %v503_v0 }
  0x76   :  { %326 = vmatpush3.bf16.msra.mxu1 %v350_v10 }
  0x77   :  { %327 = vmatprep.subr.bf16.mxu1 %v503_v0 }
  0x7a   :  { %328 = vmatpush3.bf16.msra.mxu1 %v351_v11 }
 0x134   :  { %v139_v13 = vpop.f32.mrb[0].mxu0 }
 0x135   :  { %v140_v14 = vadd.f32 %v283_v12, %v139_v13  ;;  %v311_v15 = vpop.f32.mrb[1].mxu0 }
 0x136   :  { %v142_v16 = vpop.f32.mrb[2].mxu0 }
 0x137   :  { %v286_v17 = vmul.f32 -1.442695, %v140_v14  ;;  %v312_v18 = vpop.f32.mrb[3].mxu0 }
 0x139   :  { %352 = vpow2.f32 %v286_v17 }
 0x143   :  { %v353_v19 = vpop.eup %352 }
 0x144   :  { %v148_v20 = vadd.f32 1.0, %v353_v19 }
 0x146   :  { %354 = vrcp.f32 %v148_v20 }
 0x150   :  { %v355_v21 = vpop.eup %354 }
 0x151   :  { %v151_v22 = vmul.f32 %v355_v21, %v140_v14 }
 0x153   :  { %v152_v23 = vpack.c.bf16 %v151_v22, %v151_v22 }
 0x155   :  { %330 = vmatmul.mubr.bf16.vlgmr.msra.gmra.mrb[0].mxu1 %v152_v23 }
 0x228   :  { %v258_v25 = vpop.f32.mrb[0].mxu1 }
 0x229   :  { %v259_v26 = vadd.f32 %v287_v24, %v258_v25  ;;  %v331_v27 = vpop.f32.mrb[1].mxu1 }
 0x22a   :  { %v261_v28 = vpop.f32.mrb[2].mxu1 }
 0x22b   :  { %v264_v29 = vpack.c.bf16 %v259_v26, %v259_v26  ;;  %v332_v30 = vpop.f32.mrb[3].mxu1 }
 0x22d   :  { %265 = vst [vmem:[#allocation11] sm:$0xf] %v264_v29 }
 0x22e   :  { %477 = shalt.err (!%p474_p2)
}
 0x22f   :  { %s478_s30 = scalar_lea.hbm %s613_s5, 64 }
 0x230   :  { %p479_p3 = scmp.ne.s32.totalorder %s613_s5, %s478_s30  ;;  %p482_p4 = scmp.lt.u32.totalorder %s478_s30, %s613_s5 }
 0x232   :  { %p484_p5 = pnand %p482_p4, %p479_p3 }
 0x234   :  { %487 = shalt.err (!%p484_p5)
}
 0x235   :  { %275 = dma.vmem_to_hbm [thread:$0]  %s273_s27, 64, %s613_s5, [#allocation4]  }
 0x236   :  { %494 = dma.done.wait [#allocation4], 64  }
 0x237   :  { %495 = vsyncadd [#allocation4], 4294967232 }
 0x238   :  { %279 = vsyncpa [#allocation3], 1 }
 0x239   :  { %280 = vsyncpa [#allocation6], 1 }
 0x23a   :  { %281 = vsyncpa [#allocation9], 1 }
 0x23b   :  { %282 = vsyncpa [#allocation4], 1 }

</bundles_post_ra>
